<compile_context>
chip_gen: v7x
topology: tpu7x:2x2x1
jax: 0.10.0
libtpu: 0.0.40
codegen_flags: <defaults>
</compile_context>

<pallas_src>
import functools

import jax
import jax.numpy as jnp
from jax import lax
from jax.experimental import pallas as pl
from jax.experimental.pallas import tpu as pltpu

_SUBLANES = 8
_LANE_CHOICES = (1024, 512, 256, 128)   # lane-dense widths (multiples of 128)
_TARGET_BLOCK_ELEMS = 512 * 1024        # ~2 MiB f32 per input block


def _round_up(x, m):
    return ((x + m - 1) // m) * m


def _num_tensorcores() -> int:
    """TensorCores a 'parallel' grid axis can use on one device.

    v4 / v5p (megacore) and v7x expose 2 TCs per device; v5e / v6e have 1.
    Conservative default of 1 when detection fails.
    """
    try:
        kind = jax.devices()[0].device_kind.lower()
    except Exception:
        return 1
    if any(tag in kind for tag in ("v5 lite", "v5e", "v6 lite", "v6e", "v2", "v3")):
        return 1
    if any(tag in kind for tag in ("v4", "v5p", "v5 p", "7")):
        return 2
    return 1


def _focal_loss_kernel(x_ref, t_ref, out_ref, acc_ref, *,
                       gamma, alpha, n, blocks_per_core, block_rows, lanes,
                       binary_targets):
    p = pl.program_id(0)            # core-parallel axis (megacore / v7x)
    b = pl.program_id(1)            # sequential reduction axis (per core)
    nb = pl.num_programs(1)

    @pl.when(b == 0)
    def _():
        acc_ref[...] = jnp.zeros_like(acc_ref)

    x = x_ref[...].astype(jnp.float32)
    t = t_ref[...].astype(jnp.float32)

    # Numerically stable BCE-with-logits, reduction='none'.
    e = jnp.exp(-jnp.abs(x))                         # shared by bce and pt
    bce = jnp.maximum(x, 0.0) - x * t + jnp.log1p(e)

    if binary_targets:
        # For t in {0, 1}:  exp(-bce) == where(t disagrees with sign(x), e, 1)
        #                               / (1 + e)
        # -> one exp + one (approx) reciprocal instead of two exps.
        num = jnp.where((t > 0.5) != (x >= 0.0), e, jnp.float32(1.0))
        pt = num * pl.reciprocal(1.0 + e, approx=True)
    else:
        pt = jnp.exp(-bce)

    # Clamp guards the non-integer-gamma pow path against pt marginally > 1.
    omp = jnp.maximum(1.0 - pt, 0.0)

    # Integer-gamma fast path: plain VPU multiplies, no pow -> exp/log on EUP.
    g = float(gamma)
    if g == 2.0:
        w = omp * omp
    elif g == 0.0:
        w = jnp.ones_like(omp)
    elif g.is_integer() and g >= 1.0:
        w = omp
        for _ in range(int(g) - 1):
            w = w * omp
    else:
        w = omp ** g
    focal = jnp.float32(alpha) * w * bce

    block_elems = block_rows * lanes
    full_blocks = n // block_elems          # static: blocks with no ragged edge
    gidx = p * blocks_per_core + b          # global (unclamped) block index

    @pl.when(gidx < full_blocks)
    def _():
        # Row-reduce on the VPU/XLU and accumulate into the tiny scratch.
        acc_ref[...] += jnp.sum(focal, axis=0, keepdims=True)

    @pl.when(gidx >= full_blocks)
    def _():
        # Ragged-edge / surplus block(s): mask out elements beyond n.  For the
        # clamped surplus step the whole block masks to zero.
        # TODO(synk): int32 index math limits n to < 2**31 elements (asserted).
        row = lax.broadcasted_iota(jnp.int32, focal.shape, 0)
        col = lax.broadcasted_iota(jnp.int32, focal.shape, 1)
        idx = gidx * block_elems + row * lanes + col
        masked = jnp.where(idx < n, focal, 0.0)
        acc_ref[...] += jnp.sum(masked, axis=0, keepdims=True)

    @pl.when(b == nb - 1)
    def _():
        # One cross-lane reduction per core; broadcast into this core's
        # (8, 128) output tile (lane-dense, unmasked store).
        total = jnp.sum(acc_ref[...])
        out_ref[...] = jnp.full(out_ref.shape, total, dtype=jnp.float32)


def focal_loss(inputs, targets, gamma=2.0, alpha=0.5, binary_targets=False):
    """Mean focal loss over all elements.

    inputs/targets: same shape, any rank, any float dtype (streamed natively).
    binary_targets=True enables an exact-in-spirit (approx-reciprocal) fast
    path valid only for hard {0, 1} targets; default keeps soft-label math.
    """
    assert inputs.shape == targets.shape
    n = int(inputs.size)
    assert n > 0
    # Hard guard for the in-kernel int32 index math.
    assert n < 2**31 - 2 * _TARGET_BLOCK_ELEMS, "n too large for int32 indexing"

    # Keep native dtype through HBM; f32 cast happens on the VPU in-kernel.
    x = inputs.reshape(-1)
    t = targets.reshape(-1)

    # Pick a lane width (multiple of 128) that divides n so the 2-D view is a
    # free reshape -- no host-side pad/copy of either input.
    lanes = None
    for c in _LANE_CHOICES:
        if n % c == 0:
            lanes = c
            break
    if lanes is None:
        # TODO(synk): ragged n (not a multiple of 128) still costs one padded
        # copy of both inputs; a manual-DMA tail would avoid it entirely.
        lanes = 128
        pad = _round_up(n, lanes) - n
        x = jnp.pad(x, (0, pad))
        t = jnp.pad(t, (0, pad))

    total_elems = int(x.shape[0])
    rows = total_elems // lanes
    x2 = x.reshape(rows, lanes)
    t2 = t.reshape(rows, lanes)

    # Block spans the full lane width -> every block is a contiguous HBM chunk.
    max_rows = max(_SUBLANES, (_TARGET_BLOCK_ELEMS // lanes) // _SUBLANES * _SUBLANES)
    if rows <= max_rows:
        block_rows = rows                  # single block spans the whole row dim
        num_blocks = 1
    else:
        block_rows = max_rows              # multiple of 8; ragged last block OK
        num_blocks = pl.cdiv(rows, block_rows)

    num_cores = min(_num_tensorcores(), num_blocks)
    blocks_per_core = pl.cdiv(num_blocks, num_cores)

    def in_index_map(p, b):
        # Clamp so the (at most one) surplus step on the last core re-reads its
        # previous block (no extra DMA) and the in-kernel mask zeroes it out.
        return (jnp.minimum(p * blocks_per_core + b, num_blocks - 1), 0)

    in_spec = pl.BlockSpec((block_rows, lanes), in_index_map)
    out_spec = pl.BlockSpec((_SUBLANES, 128), lambda p, b: (p, 0))

    kernel = functools.partial(
        _focal_loss_kernel, gamma=float(gamma), alpha=float(alpha), n=n,
        blocks_per_core=blocks_per_core, block_rows=block_rows, lanes=lanes,
        binary_targets=bool(binary_targets))

    partial_sums = pl.pallas_call(
        kernel,
        out_shape=jax.ShapeDtypeStruct((num_cores * _SUBLANES, 128), jnp.float32),
        grid_spec=pltpu.PrefetchScalarGridSpec(
            num_scalar_prefetch=0,
            grid=(num_cores, blocks_per_core),
            in_specs=[in_spec, in_spec],
            out_specs=out_spec,
            scratch_shapes=[pltpu.VMEM((1, lanes), jnp.float32)],
        ),
        compiler_params=pltpu.CompilerParams(
            dimension_semantics=("parallel", "arbitrary"),
        ),
    )(x2, t2)

    # Each core wrote its partial sum broadcast over its own (8, 128) tile.
    per_core = partial_sums[::_SUBLANES, 0]
    return jnp.sum(per_core) / n


def _focal_loss_ref(inputs, targets, gamma=2.0, alpha=0.5):
    x = inputs.astype(jnp.float32)
    t = targets.astype(jnp.float32)
    bce = jnp.maximum(x, 0.0) - x * t + jnp.log1p(jnp.exp(-jnp.abs(x)))
    pt = jnp.exp(-bce)
    return jnp.mean(alpha * (1.0 - pt) ** gamma * bce)


if __name__ == "__main__":
    key = jax.random.PRNGKey(0)
    k1, k2, k3, k4 = jax.random.split(key, 4)

    # NCHW logits and binary targets, small shapes: batch=2, channels=4, 16x16.
    shape = (2, 4, 16, 16)
    logits = jax.random.normal(k1, shape, dtype=jnp.float32)
    targets = jax.random.bernoulli(k2, 0.5, shape).astype(jnp.float32)

    # Default (exact, soft-label-safe) path.
    loss = focal_loss(logits, targets, gamma=2.0, alpha=0.5)
    jax.block_until_ready(loss)
    ref = _focal_loss_ref(logits, targets, gamma=2.0, alpha=0.5)
    assert jnp.allclose(loss, ref, rtol=1e-5, atol=1e-6), (loss, ref)

    # Gated binary-target fast path (one fewer transcendental; approx recip).
    loss_bin = focal_loss(logits, targets, gamma=2.0, alpha=0.5,
                          binary_targets=True)
    jax.block_until_ready(loss_bin)
    assert jnp.allclose(loss_bin, ref, rtol=5e-3, atol=1e-4), (loss_bin, ref)

    # Ragged element count (n not a multiple of 128) exercises the mask path.
    shape2 = (2, 3, 17, 13)
    logits2 = jax.random.normal(k3, shape2, dtype=jnp.float32)
    targets2 = jax.random.bernoulli(k4, 0.5, shape2).astype(jnp.float32)
    loss2 = focal_loss(logits2, targets2, gamma=2.0, alpha=0.5)
    jax.block_until_ready(loss2)
    ref2 = _focal_loss_ref(logits2, targets2, gamma=2.0, alpha=0.5)
    assert jnp.allclose(loss2, ref2, rtol=1e-5, atol=1e-6), (loss2, ref2)

    print("KERNEL_OK")
</pallas_src>

<mosaic_0001>
module attributes {stable_mosaic.version = 11 : i64} {
  func.func @_focal_loss_kernel(%arg0: i32, %arg1: i32, %arg2: memref<2x1024xf32, #tpu.memory_space<vmem>>, %arg3: memref<2x1024xf32, #tpu.memory_space<vmem>>, %arg4: memref<8x128xf32, #tpu.memory_space<vmem>>, %arg5: memref<1x1024xf32, #tpu.memory_space<vmem>>) attributes {dimension_semantics = [#tpu.dimension_semantics<parallel>, #tpu.dimension_semantics<arbitrary>], iteration_bounds = array<i64: 1, 1>, scalar_prefetch = 0 : i64, scratch_operands = 1 : i64, tpu.core_type = #tpu.core_type<tc>, window_params = [{transform_indices = @transform_0, window_bounds = array<i64: 2, 1024>}, {transform_indices = @transform_1, window_bounds = array<i64: 2, 1024>}, {transform_indices = @transform_2, window_bounds = array<i64: 8, 128>}]} {
    %c0_i32 = arith.constant 0 : i32
    %0 = arith.cmpi eq, %arg1, %c0_i32 : i32
    %1 = arith.extui %0 : i1 to i32
    %c0_i32_0 = arith.constant 0 : i32
    %2 = arith.cmpi ne, %1, %c0_i32_0 : i32
    scf.if %2 {
      %cst_15 = arith.constant 0.000000e+00 : f32
      %37 = vector.broadcast %cst_15 : f32 to vector<1x1024xf32>
      %c0_16 = arith.constant 0 : index
      %c0_17 = arith.constant 0 : index
      %38 = vector.load %arg5[%c0_16, %c0_17] : memref<1x1024xf32, #tpu.memory_space<vmem>>, vector<1x1024xf32>
      tpu.vector_store %arg5[%c0_16, %c0_17], %37 {strides = array<i32>} : memref<1x1024xf32, #tpu.memory_space<vmem>>, vector<1x1024xf32>,
    } else {
    }
    %c0 = arith.constant 0 : index
    %c0_1 = arith.constant 0 : index
    %3 = vector.load %arg2[%c0, %c0_1] : memref<2x1024xf32, #tpu.memory_space<vmem>>, vector<2x1024xf32>
    %c0_2 = arith.constant 0 : index
    %c0_3 = arith.constant 0 : index
    %4 = vector.load %arg3[%c0_2, %c0_3] : memref<2x1024xf32, #tpu.memory_space<vmem>>, vector<2x1024xf32>
    %5 = math.absf %3 : vector<2x1024xf32>
    %cst = arith.constant 0.000000e+00 : f32
    %6 = vector.broadcast %cst : f32 to vector<2x1024xf32>
    %7 = arith.subf %6, %5 : vector<2x1024xf32>
    %8 = math.exp %7 : vector<2x1024xf32>
    %cst_4 = arith.constant 0.000000e+00 : f32
    %9 = vector.broadcast %cst_4 : f32 to vector<2x1024xf32>
    %10 = arith.maximumf %3, %9 : vector<2x1024xf32>
    %11 = arith.mulf %3, %4 : vector<2x1024xf32>
    %12 = arith.subf %10, %11 : vector<2x1024xf32>
    %13 = math.log1p %8 : vector<2x1024xf32>
    %14 = arith.addf %12, %13 : vector<2x1024xf32>
    %cst_5 = arith.constant 0.000000e+00 : f32
    %15 = vector.broadcast %cst_5 : f32 to vector<2x1024xf32>
    %16 = arith.subf %15, %14 : vector<2x1024xf32>
    %17 = math.exp %16 : vector<2x1024xf32>
    %cst_6 = arith.constant 1.000000e+00 : f32
    %18 = vector.broadcast %cst_6 : f32 to vector<2x1024xf32>
    %19 = arith.subf %18, %17 : vector<2x1024xf32>
    %cst_7 = arith.constant 0.000000e+00 : f32
    %20 = vector.broadcast %cst_7 : f32 to vector<2x1024xf32>
    %21 = arith.maximumf %19, %20 : vector<2x1024xf32>
    %22 = arith.mulf %21, %21 : vector<2x1024xf32>
    %cst_8 = arith.constant 5.000000e-01 : f32
    %23 = vector.broadcast %cst_8 : f32 to vector<2x1024xf32>
    %24 = arith.mulf %23, %22 : vector<2x1024xf32>
    %25 = arith.mulf %24, %14 : vector<2x1024xf32>
    %c1_i32 = arith.constant 1 : i32
    %26 = arith.muli %arg0, %c1_i32 : i32
    %27 = arith.addi %26, %arg1 : i32
    %c1_i32_9 = arith.constant 1 : i32
    %28 = arith.cmpi slt, %27, %c1_i32_9 : i32
    %29 = arith.extui %28 : i1 to i32
    %c0_i32_10 = arith.constant 0 : i32
    %30 = arith.cmpi ne, %29, %c0_i32_10 : i32
    scf.if %30 {
      %c0_15 = arith.constant 0 : index
      %c0_16 = arith.constant 0 : index
      %37 = vector.load %arg5[%c0_15, %c0_16] : memref<1x1024xf32, #tpu.memory_space<vmem>>, vector<1x1024xf32>
      %cst_17 = arith.constant dense<0.000000e+00> : vector<1024xf32>
      %38 = vector.multi_reduction <add>, %25, %cst_17 [0] : vector<2x1024xf32> to vector<1024xf32>
      %39 = vector.shape_cast %38 : vector<1024xf32> to vector<1x1024xf32>
      %40 = arith.addf %37, %39 : vector<1x1024xf32>
      %c0_18 = arith.constant 0 : index
      %c0_19 = arith.constant 0 : index
      %41 = vector.load %arg5[%c0_18, %c0_19] : memref<1x1024xf32, #tpu.memory_space<vmem>>, vector<1x1024xf32>
      tpu.vector_store %arg5[%c0_18, %c0_19], %40 {strides = array<i32>} : memref<1x1024xf32, #tpu.memory_space<vmem>>, vector<1x1024xf32>,
    } else {
    }
    %c1_i32_11 = arith.constant 1 : i32
    %31 = arith.cmpi sge, %27, %c1_i32_11 : i32
    %32 = arith.extui %31 : i1 to i32
    %c0_i32_12 = arith.constant 0 : i32
    %33 = arith.cmpi ne, %32, %c0_i32_12 : i32
    scf.if %33 {
      %37 = tpu.iota {dimensions = array<i32: 0>} : vector<2x1024xi32>
      %38 = tpu.iota {dimensions = array<i32: 1>} : vector<2x1024xi32>
      %c2048_i32 = arith.constant 2048 : i32
      %39 = arith.muli %27, %c2048_i32 : i32
      %c1024_i32 = arith.constant 1024 : i32
      %40 = vector.broadcast %c1024_i32 : i32 to vector<2x1024xi32>
      %41 = arith.muli %37, %40 : vector<2x1024xi32>
      %42 = vector.broadcast %39 : i32 to vector<2x1024xi32>
      %43 = arith.addi %42, %41 : vector<2x1024xi32>
      %44 = arith.addi %43, %38 : vector<2x1024xi32>
      %c2048_i32_15 = arith.constant 2048 : i32
      %45 = vector.broadcast %c2048_i32_15 : i32 to vector<2x1024xi32>
      %46 = arith.cmpi slt, %44, %45 : vector<2x1024xi32>
      %cst_16 = arith.constant 0.000000e+00 : f32
      %47 = vector.broadcast %cst_16 : f32 to vector<2x1024xf32>
      %48 = arith.select %46, %25, %47 : vector<2x1024xi1>, vector<2x1024xf32>
      %c0_17 = arith.constant 0 : index
      %c0_18 = arith.constant 0 : index
      %49 = vector.load %arg5[%c0_17, %c0_18] : memref<1x1024xf32, #tpu.memory_space<vmem>>, vector<1x1024xf32>
      %cst_19 = arith.constant dense<0.000000e+00> : vector<1024xf32>
      %50 = vector.multi_reduction <add>, %48, %cst_19 [0] : vector<2x1024xf32> to vector<1024xf32>
      %51 = vector.shape_cast %50 : vector<1024xf32> to vector<1x1024xf32>
      %52 = arith.addf %49, %51 : vector<1x1024xf32>
      %c0_20 = arith.constant 0 : index
      %c0_21 = arith.constant 0 : index
      %53 = vector.load %arg5[%c0_20, %c0_21] : memref<1x1024xf32, #tpu.memory_space<vmem>>, vector<1x1024xf32>
      tpu.vector_store %arg5[%c0_20, %c0_21], %52 {strides = array<i32>} : memref<1x1024xf32, #tpu.memory_space<vmem>>, vector<1x1024xf32>,
    } else {
    }
    %c0_i32_13 = arith.constant 0 : i32
    %34 = arith.cmpi eq, %arg1, %c0_i32_13 : i32
    %35 = arith.extui %34 : i1 to i32
    %c0_i32_14 = arith.constant 0 : i32
    %36 = arith.cmpi ne, %35, %c0_i32_14 : i32
    scf.if %36 {
      %c0_15 = arith.constant 0 : index
      %c0_16 = arith.constant 0 : index
      %37 = vector.load %arg5[%c0_15, %c0_16] : memref<1x1024xf32, #tpu.memory_space<vmem>>, vector<1x1024xf32>
      %38 = vector.shape_cast %37 : vector<1x1024xf32> to vector<1x1x1024xf32>
      %cst_17 = arith.constant dense<0.000000e+00> : vector<1xf32>
      %39 = vector.multi_reduction <add>, %38, %cst_17 [1, 2] : vector<1x1x1024xf32> to vector<1xf32>
      %40 = vector.shape_cast %39 : vector<1xf32> to vector<1x1x1xf32>
      %41 = vector.extract %40[0, 0, 0] : f32 from vector<1x1x1xf32>
      %42 = vector.broadcast %41 : f32 to vector<8x128xf32>
      %c0_18 = arith.constant 0 : index
      %c0_19 = arith.constant 0 : index
      %43 = vector.load %arg4[%c0_18, %c0_19] : memref<8x128xf32, #tpu.memory_space<vmem>>, vector<8x128xf32>
      tpu.vector_store %arg4[%c0_18, %c0_19], %42 {strides = array<i32>} : memref<8x128xf32, #tpu.memory_space<vmem>>, vector<8x128xf32>,
    } else {
    }
    return
  }
  func.func @transform_0(%arg0: i32, %arg1: i32) -> (i32, i32) {
    %c1_i32 = arith.constant 1 : i32
    %0 = arith.muli %arg0, %c1_i32 : i32
    %1 = arith.addi %0, %arg1 : i32
    %c0_i32 = arith.constant 0 : i32
    %2 = arith.minsi %1, %c0_i32 : i32
    %c0_i32_0 = arith.constant 0 : i32
    %c0_i32_1 = arith.constant 0 : i32
    return %2, %c0_i32_0 : i32, i32
  }
  func.func @transform_1(%arg0: i32, %arg1: i32) -> (i32, i32) {
    %c1_i32 = arith.constant 1 : i32
    %0 = arith.muli %arg0, %c1_i32 : i32
    %1 = arith.addi %0, %arg1 : i32
    %c0_i32 = arith.constant 0 : i32
    %2 = arith.minsi %1, %c0_i32 : i32
    %c0_i32_0 = arith.constant 0 : i32
    %c0_i32_1 = arith.constant 0 : i32
    return %2, %c0_i32_0 : i32, i32
  }
  func.func @transform_2(%arg0: i32, %arg1: i32) -> (i32, i32) {
    %c0_i32 = arith.constant 0 : i32
    %c0_i32_0 = arith.constant 0 : i32
    return %arg0, %c0_i32 : i32, i32
  }
}

</mosaic_0001>

<bundles_post_ra>
// kernel: tpu_custom_call.1
= control target key start
LH: loop header
LB: loop body
LE: loop exit
PB: predicated region body
PF: predicated region fallthrough
CT: control target
= control target key end

     0   :  { %7 = vsyncpa [#allocation4], 0  ;;  %s752_s0 = inlined_call_operand.hbm [shape: f32[2,1024], index: 0, kind: input, shape index: {}]   ;;  %s753_s1 = inlined_call_operand.hbm [shape: f32[2,1024], index: 1, kind: input, shape index: {}]   ;;  %s754_s2 = inlined_call_operand.hbm [shape: f32[8,128], index: 2, kind: output, shape index: {}]  }
   0x1   :  { %8 = vsyncpa [#allocation7], 0 }
   0x2   :  { %9 = vsyncpa [#allocation5], 0  ;;  %s668_s9 = smov [#allocation3]   ;;  %s669_s11 = smov [#allocation6]  }
   0x3   :  { %s22_s10 = sshll.u32 %s668_s9, 4  ;;  %s38_s12 = sshll.u32 %s669_s11, 4  ;;  %s23_s10 = int_to_ptr.vmem [resolvable:$true] %s22_s10  ;;  %s39_s12 = int_to_ptr.vmem [resolvable:$true] %s38_s12 }
   0x4   :  { %s596_s15 = scalar_lea.hbm %s752_s0, 256 }
   0x5   :  { %p597_p0 = scmp.ne.s32.totalorder %s752_s0, %s596_s15  ;;  %p600_p1 = scmp.lt.u32.totalorder %s596_s15, %s752_s0 }
   0x7   :  { %p602_p2 = pnand %p600_p1, %p597_p0 }
   0x9   :  { %605 = shalt.err (!%p602_p2)
}
   0xa   :  { %s606_s20 = scalar_lea.vmem %s23_s10, 256  ;;  %p611_p4 = scmp.lt.s32.totalorder %s23_s10, %s23_s10 }
   0xb   :  { %p607_p3 = scmp.ne.s32.totalorder %s23_s10, %s606_s20  ;;  %p612_p5 = scmp.lt.s32.totalorder %s606_s20, %s606_s20 }
   0xd   :  { %p613_p6 = por %p612_p5, %p611_p4 }
   0xf   :  { %p614_p7 = pnand %p613_p6, %p607_p3 }
  0x11   :  { %617 = shalt.err (!%p614_p7)
}
  0x12   :  { %25 = dma.hbm_to_vmem [thread:$0]  %s752_s0, 256, %s23_s10, [#allocation4]  }
  0x13   :  { %s618_s25 = scalar_lea.hbm %s753_s1, 256 }
  0x14   :  { %p619_p8 = scmp.ne.s32.totalorder %s753_s1, %s618_s25  ;;  %p622_p9 = scmp.lt.u32.totalorder %s618_s25, %s753_s1 }
  0x16   :  { %p624_p10 = pnand %p622_p9, %p619_p8 }
  0x18   :  { %627 = shalt.err (!%p624_p10)
}
  0x19   :  { %s628_s30 = scalar_lea.vmem %s39_s12, 256  ;;  %p633_p12 = scmp.lt.s32.totalorder %s39_s12, %s39_s12 }
  0x1a   :  { %p629_p11 = scmp.ne.s32.totalorder %s39_s12, %s628_s30  ;;  %p634_p13 = scmp.lt.s32.totalorder %s628_s30, %s628_s30 }
  0x1c   :  { %p635_p0 = por %p634_p13, %p633_p12 }
  0x1e   :  { %p636_p1 = pnand %p635_p0, %p629_p11 }
  0x20   :  { %639 = shalt.err (!%p636_p1)
}
  0x21   :  { %41 = dma.hbm_to_vmem [thread:$0]  %s753_s1, 256, %s39_s12, [#allocation7]  }
  0x22   :  { %662 = dma.done.wait [#allocation4], 256  }
  0x23   :  { %663 = vsyncadd [#allocation4], 4294967040 }
  0x24   :  { %664 = dma.done.wait [#allocation7], 256  }
  0x25   :  { %665 = vsyncadd [#allocation7], 4294967040  ;;  %v59_v0 = vld [vmem:[#allocation3] sm:$0xff]  ;;  %v60_v1 = vld [vmem:[#allocation3 + $0x8] sm:$0xff]  ;;  %v670_v40 = vmov 1983009808   ;;  %v125_v42 = vlaneseq }
  0x26   :  { %v63_v2 = vand.u32 2147483647, %v59_v0  ;;  %v64_v3 = vand.u32 2147483647, %v60_v1  ;;  %v61_v14 = vld [vmem:[#allocation6] sm:$0xff]  ;;  %v62_v15 = vld [vmem:[#allocation6 + $0x8] sm:$0xff]  ;;  %v123_v41 = vunpack.c.l.s4 %v670_v40 }
  0x27   :  { %v71_v17 = vmax.f32 %v59_v0, 0.0  ;;  %v73_v18 = vmul.f32 %v61_v14, %v59_v0  ;;  %v72_v21 = vmax.f32 %v60_v1, 0.0  ;;  %v74_v22 = vmul.f32 %v62_v15, %v60_v1  ;;  %s672_s1 = smov [#allocation8]  }
  0x28   :  { %v65_v4 = vsub.f32 0.0, %v63_v2  ;;  %v66_v5 = vsub.f32 0.0, %v64_v3  ;;  %v124_v48 = vunpack.c.0.s8 %v123_v41  ;;  %v712_v49 = vshrl.u32 %v125_v42, 7  ;;  %s563_s4 = sshll.u32 %s672_s1, 4  ;;  %s564_s4 = int_to_ptr.vmem [resolvable:$true] %s563_s4 }
  0x29   :  { %v75_v26 = vsub.f32 %v71_v17, %v73_v18  ;;  %v76_v29 = vsub.f32 %v72_v21, %v74_v22  ;;  %v671_v57 = vmov 1966171168   ;;  %vm163_vm2 = vcmask 1041408   ;;  %s640_s6 = scalar_lea.vmem %s564_s4, 128  ;;  %p645_p3 = scmp.lt.s32.totalorder %s564_s4, %s564_s4 }
  0x2a   :  { %v67_v6 = vmul.f32 1.442695, %v65_v4  ;;  %v69_v7 = vmul.f32 1.442695, %v66_v5  ;;  %v127_v54 = vsub.s32 %v124_v48, %v712_v49  ;;  %v233_v58 = vunpack.c.l.s4 %v671_v57  ;;  %p641_p2 = scmp.ne.s32.totalorder %s564_s4, %s640_s6  ;;  %p646_p4 = scmp.lt.s32.totalorder %s640_s6, %s640_s6 }
  0x2b   :  { %vm530_vm3 = vcmask 1040384  }
  0x2c   :  { %584 = vpow2.f32 %v67_v6  ;;  %v234_v3 = vunpack.c.0.s8 %v233_v58  ;;  %p647_p5 = por %p646_p4, %p645_p3 }
  0x2d   :  { %586 = vpow2.f32 %v69_v7 }
  0x2e   :  { %p648_p6 = pnand %p647_p5, %p641_p2 }
  0x36   :  { %v585_v8 = vpop.eup %584 }
  0x37   :  { %v587_v9 = vpop.eup %586  ;;  %v77_v10 = vadd.f32 1.0, %v585_v8  ;;  %v80_v12 = vmul.f32 -0.5, %v585_v8  ;;  %v83_v19 = vand.u32 2147483647, %v585_v8 }
  0x38   :  { %v86_v11 = vadd.f32 1.0, %v587_v9  ;;  %v89_v13 = vmul.f32 -0.5, %v587_v9  ;;  %v92_v23 = vand.u32 2147483647, %v587_v9 }
  0x39   :  { %588 = vlog2.f32 %v77_v10  ;;  %v81_v16 = vadd.f32 1.0, %v80_v12  ;;  %vm84_vm0 = vcmp.lt.f32.partialorder %v83_v19, 0.0004427343 }
  0x3a   :  { %590 = vlog2.f32 %v86_v11  ;;  %v90_v20 = vadd.f32 1.0, %v89_v13  ;;  %vm93_vm1 = vcmp.lt.f32.partialorder %v92_v23, 0.0004427343 }
  0x3b   :  { %v82_v24 = vmul.f32 %v585_v8, %v81_v16 }
  0x3c   :  { %v91_v27 = vmul.f32 %v587_v9, %v90_v20 }
  0x43   :  { %v589_v25 = vpop.eup %588 }
  0x44   :  { %v591_v28 = vpop.eup %590  ;;  %v79_v30 = vmul.f32 0.6931472, %v589_v25 }
  0x45   :  { %v88_v31 = vmul.f32 0.6931472, %v591_v28 }
  0x46   :  { %v85_v32 = vsel %vm84_vm0, %v82_v24, %v79_v30 }
  0x47   :  { %v94_v33 = vsel %vm93_vm1, %v91_v27, %v88_v31  ;;  %v95_v34 = vadd.f32 %v85_v32, %v75_v26 }
  0x48   :  { %v96_v35 = vadd.f32 %v94_v33, %v76_v29 }
  0x49   :  { %v97_v36 = vsub.f32 0.0, %v95_v34 }
  0x4a   :  { %v98_v37 = vsub.f32 0.0, %v96_v35 }
  0x4b   :  { %v99_v38 = vmul.f32 1.442695, %v97_v36 }
  0x4c   :  { %v101_v39 = vmul.f32 1.442695, %v98_v37 }
  0x4d   :  { %592 = vpow2.f32 %v99_v38 }
  0x4e   :  { %594 = vpow2.f32 %v101_v39 }
  0x57   :  { %v593_v43 = vpop.eup %592 }
  0x58   :  { %v595_v44 = vpop.eup %594  ;;  %v103_v45 = vsub.f32 1.0, %v593_v43 }
  0x59   :  { %v104_v46 = vsub.f32 1.0, %v595_v44 }
  0x5a   :  { %v105_v47 = vmax.f32 %v103_v45, 0.0 }
  0x5b   :  { %v106_v50 = vmax.f32 %v104_v46, 0.0 }
  0x5c   :  { %v107_v51 = vmul.f32 %v105_v47, %v105_v47 }
  0x5d   :  { %v108_v52 = vmul.f32 %v106_v50, %v106_v50 }
  0x5e   :  { %v109_v53 = vmul.f32 0.5, %v107_v51 }
  0x5f   :  { %v110_v55 = vmul.f32 0.5, %v108_v52 }
  0x60   :  { %v111_v56 = vmul.f32 %v109_v53, %v95_v34 }
  0x61   :  { %v112_v59 = vmul.f32 %v110_v55, %v96_v35  ;;  %v237_v55 = vsub.s32 %v234_v3, %v712_v49 }
  0x62   :  { %v121_v60 = vcombine.high %v111_v56, %v111_v56  ;;  %v128_v61 = vrot.slane %v111_v56, %v127_v54 }
  0x63   :  { %v138_v62 = vcombine.high %v112_v59, %v112_v59  ;;  %v145_v63 = vrot.slane %v112_v59, %v127_v54 }
  0x64   :  { %v135_v0 = vrot.slane %v121_v60, %v127_v54  ;;  %v136_v1 = vcombine.high %v128_v61, %v128_v61  ;;  %v164_v2 = vsel %vm163_vm2, %v128_v61, 0.0 }
  0x65   :  { %v152_v4 = vrot.slane %v138_v62, %v127_v54  ;;  %v153_v5 = vcombine.high %v145_v63, %v145_v63  ;;  %v165_v6 = vrot.slane %v164_v2, 4  ;;  %v192_v7 = vsel %vm163_vm2, %v145_v63, 0.0 }
  0x66   :  { %v137_v8 = vcombine.high %v135_v0, %v135_v0  ;;  %v171_v9 = vsel %vm163_vm2, %v136_v1, 0.0  ;;  %v178_v10 = vsel %vm163_vm2, %v135_v0, 0.0  ;;  %v193_v11 = vrot.slane %v192_v7, 4 }
  0x67   :  { %v154_v12 = vcombine.high %v152_v4, %v152_v4  ;;  %v166_v13 = vadd.f32 %v165_v6, %v164_v2  ;;  %v172_v14 = vrot.slane %v171_v9, 4  ;;  %v179_v15 = vrot.slane %v178_v10, 4 }
  0x68   :  { %v185_v16 = vsel %vm163_vm2, %v137_v8, 0.0  ;;  %v194_v17 = vadd.f32 %v193_v11, %v192_v7  ;;  %v199_v18 = vsel %vm163_vm2, %v153_v5, 0.0  ;;  %v206_v19 = vsel %vm163_vm2, %v152_v4, 0.0 }
  0x69   :  { %v167_v20 = vrot.slane %v166_v13, 2  ;;  %v173_v21 = vadd.f32 %v172_v14, %v171_v9  ;;  %v180_v22 = vadd.f32 %v179_v15, %v178_v10  ;;  %v186_v23 = vrot.slane %v185_v16, 4 }
  0x6a   :  { %v195_v24 = vrot.slane %v194_v17, 2  ;;  %v200_v25 = vrot.slane %v199_v18, 4  ;;  %v207_v26 = vrot.slane %v206_v19, 4  ;;  %v213_v27 = vsel %vm163_vm2, %v154_v12, 0.0 }
  0x6b   :  { %v168_v28 = vadd.f32 %v167_v20, %v166_v13  ;;  %v174_v29 = vrot.slane %v173_v21, 2  ;;  %v181_v30 = vrot.slane %v180_v22, 2  ;;  %v187_v31 = vadd.f32 %v186_v23, %v185_v16 }
  0x6c   :  { %v196_v32 = vadd.f32 %v195_v24, %v194_v17  ;;  %v201_v33 = vadd.f32 %v200_v25, %v199_v18  ;;  %v208_v34 = vadd.f32 %v207_v26, %v206_v19  ;;  %v214_v35 = vrot.slane %v213_v27, 4 }
  0x6d   :  { %v169_v36 = vrot.slane %v168_v28, 1  ;;  %v175_v37 = vadd.f32 %v174_v29, %v173_v21  ;;  %v182_v38 = vadd.f32 %v181_v30, %v180_v22  ;;  %v188_v39 = vrot.slane %v187_v31, 2 }
  0x6e   :  { %v197_v40 = vrot.slane %v196_v32, 1  ;;  %v202_v41 = vrot.slane %v201_v33, 2  ;;  %v209_v42 = vrot.slane %v208_v34, 2  ;;  %v215_v43 = vadd.f32 %v214_v35, %v213_v27 }
  0x6f   :  { %v170_v44 = vadd.f32 %v169_v36, %v168_v28  ;;  %v176_v45 = vrot.slane %v175_v37, 1  ;;  %v183_v46 = vrot.slane %v182_v38, 1  ;;  %v189_v47 = vadd.f32 %v188_v39, %v187_v31 }
  0x70   :  { %v203_v48 = vadd.f32 %v202_v41, %v201_v33  ;;  %v210_v50 = vadd.f32 %v209_v42, %v208_v34  ;;  %v216_v51 = vrot.slane %v215_v43, 2  ;;  %v198_v56 = vadd.f32 %v197_v40, %v196_v32 }
  0x71   :  { %v177_v52 = vadd.f32 %v176_v45, %v175_v37  ;;  %v184_v53 = vadd.f32 %v183_v46, %v182_v38  ;;  %v190_v54 = vrot.slane %v189_v47, 1  ;;  %v492_v12 = vsub.s32 0, %v712_v49 }
  0x72   :  { %v204_v57 = vrot.slane %v203_v48, 1  ;;  %v211_v58 = vrot.slane %v210_v50, 1  ;;  %v217_v59 = vadd.f32 %v216_v51, %v215_v43  ;;  %v496_v14 = vsub.s32 1, %v712_v49 }
  0x73   :  { %v191_v60 = vadd.f32 %v190_v54, %v189_v47  ;;  %v228_v61 = vcombine.low %v170_v44, %v177_v52  ;;  %v500_v15 = vsub.s32 2, %v712_v49  ;;  %v504_v16 = vsub.s32 3, %v712_v49 }
  0x74   :  { %v205_v62 = vadd.f32 %v204_v57, %v203_v48  ;;  %v212_v63 = vadd.f32 %v211_v58, %v210_v50  ;;  %v218_v0 = vrot.slane %v217_v59, 1  ;;  %v508_v18 = vsub.s32 4, %v712_v49 }
  0x75   :  { %v229_v1 = vcombine.low %v184_v53, %v191_v60  ;;  %v238_v2 = vrot.slane %v228_v61, %v237_v55  ;;  %v512_v19 = vsub.s32 5, %v712_v49  ;;  %v516_v24 = vsub.s32 6, %v712_v49 }
  0x76   :  { %v219_v4 = vadd.f32 %v218_v0, %v217_v59  ;;  %v230_v5 = vcombine.low %v198_v56, %v205_v62  ;;  %v520_v31 = vsub.s32 7, %v712_v49 }
  0x77   :  { %v245_v6 = vrot.slane %v229_v1, %v237_v55 }
  0x78   :  { %v231_v7 = vcombine.low %v212_v63, %v219_v4  ;;  %v252_v8 = vrot.slane %v230_v5, %v237_v55 }
  0x79   :  { %v260_v9 = vcombine.low %v238_v2, %v245_v6 }
  0x7a   :  { %v259_v10 = vrot.slane %v231_v7, %v237_v55 }
  0x7b   :  { %v268_v3 = vrot.slane %v260_v9, %v237_v55 }
  0x7c   :  { %v261_v11 = vcombine.low %v252_v8, %v259_v10 }
  0x7e   :  { %v275_v13 = vrot.slane %v261_v11, %v237_v55 }
  0x80   :  { %v276_v17 = vcombine.low %v268_v3, %v275_v13 }
  0x82   :  { %v493_v20 = vrot.slane %v276_v17, %v492_v12  ;;  %v497_v21 = vrot.slane %v276_v17, %v496_v14  ;;  %v501_v22 = vrot.slane %v276_v17, %v500_v15  ;;  %v505_v23 = vrot.slane %v276_v17, %v504_v16 }
  0x83   :  { %v509_v25 = vrot.slane %v276_v17, %v508_v18  ;;  %v513_v30 = vrot.slane %v276_v17, %v512_v19  ;;  %v517_v34 = vrot.slane %v276_v17, %v516_v24  ;;  %v521_v37 = vrot.slane %v276_v17, %v520_v31 }
  0x84   :  { %v531_v26 = vsel %vm530_vm3, %v493_v20, 0.0  ;;  %v532_v27 = vsel %vm530_vm3, %v497_v21, 0.0  ;;  %v534_v28 = vsel %vm530_vm3, %v501_v22, 0.0  ;;  %v536_v32 = vsel %vm530_vm3, %v505_v23, 0.0 }
  0x85   :  { %v533_v29 = vadd.f32 %v532_v27, %v531_v26  ;;  %v538_v35 = vsel %vm530_vm3, %v509_v25, 0.0  ;;  %v540_v38 = vsel %vm530_vm3, %v513_v30, 0.0  ;;  %v542_v40 = vsel %vm530_vm3, %v517_v34, 0.0 }
  0x86   :  { %v544_v42 = vsel %vm530_vm3, %v521_v37, 0.0 }
  0x87   :  { %v535_v33 = vadd.f32 %v534_v28, %v533_v29 }
  0x89   :  { %v537_v36 = vadd.f32 %v536_v32, %v535_v33 }
  0x8b   :  { %v539_v39 = vadd.f32 %v538_v35, %v537_v36 }
  0x8d   :  { %v541_v41 = vadd.f32 %v540_v38, %v539_v39 }
  0x8f   :  { %v543_v43 = vadd.f32 %v542_v40, %v541_v41 }
  0x91   :  { %v545_v44 = vadd.f32 %v544_v42, %v543_v43 }
  0x93   :  { %546 = vadd.xlane.f32.xlu0 %v545_v44 }
 0x120   :  { %v547_v49 = vpop.xlane.xlu0 %546 }
 0x121   :  { %v548_v45 = vrot.slane %v547_v49, 4 }
 0x123   :  { %v549_v46 = vadd.f32 %v548_v45, %v547_v49 }
 0x125   :  { %v550_v47 = vrot.slane %v549_v46, 2 }
 0x127   :  { %v551_v48 = vadd.f32 %v550_v47, %v549_v46 }
 0x129   :  { %v552_v50 = vrot.slane %v551_v48, 1 }
 0x12b   :  { %v553_v51 = vadd.f32 %v552_v50, %v551_v48 }
 0x12d   :  { %577 = vpush %v553_v51 }
 0x15e   :  { %s578_s5 = spop %577 }
 0x15f   :  { %v555_v52 = vstv %s578_s5 }
 0x160   :  { %556 = vst [vmem:[#allocation8] sm:$0xff] %v555_v52 }
 0x161   :  { %651 = shalt.err (!%p648_p6)
}
 0x162   :  { %s652_s9 = scalar_lea.hbm %s754_s2, 128 }
 0x163   :  { %p653_p7 = scmp.ne.s32.totalorder %s754_s2, %s652_s9  ;;  %p656_p8 = scmp.lt.u32.totalorder %s652_s9, %s754_s2 }
 0x165   :  { %p658_p9 = pnand %p656_p8, %p653_p7 }
 0x167   :  { %661 = shalt.err (!%p658_p9)
}
 0x168   :  { %566 = dma.vmem_to_hbm [thread:$0]  %s564_s4, 128, %s754_s2, [#allocation5]  }
 0x169   :  { %666 = dma.done.wait [#allocation5], 128  }
 0x16a   :  { %667 = vsyncadd [#allocation5], 4294967168 }
 0x16b   :  { %570 = vsyncpa [#allocation4], 1 }
 0x16c   :  { %571 = vsyncpa [#allocation7], 1 }
 0x16d   :  { %572 = vsyncpa [#allocation5], 1 }

</bundles_post_ra>
